<compile_context>
chip_gen: v7x
topology: tpu7x:2x2x1
jax: 0.10.0
libtpu: 0.0.40
codegen_flags: <defaults>
</compile_context>

<pallas_src>
import functools

import jax
import jax.numpy as jnp
from jax.experimental import pallas as pl
from jax.experimental.pallas import tpu as pltpu

BN_EPS = 1e-5
LANE = 128
SUBLANE = 8


def _round_up(x, m):
    return (x + m - 1) // m * m


# ----------------------------- Pallas kernel --------------------------------

def gcn_fused_kernel(a_ref, x_ref, w1_ref, b1_ref, w2_ref, b2_ref,
                     p_ref, wf_ref, bf_ref, o_ref):
    """Fused: relu((A@X)@W1'+b1') -> relu((A@.)@W2'+b2') -> (P@.)@Wf + bf."""
    a = a_ref[...]                                       # bf16 [NP, NP]

    # ---- layer 1: (A @ X) @ W1' + b1', ReLU.   (A@X first since F_in <= F_out)
    ax = jnp.dot(a, x_ref[...], preferred_element_type=jnp.float32)
    h = jnp.dot(ax.astype(jnp.bfloat16), w1_ref[...],
                preferred_element_type=jnp.float32) + b1_ref[...]
    h = jnp.maximum(h, 0.0).astype(jnp.bfloat16)
    # TODO(synk): training-mode dropout (pltpu.prng_* mask) omitted — inference.

    # ---- layer 2: (A @ H) @ W2' + b2', ReLU.
    ah = jnp.dot(a, h, preferred_element_type=jnp.float32)
    h = jnp.dot(ah.astype(jnp.bfloat16), w2_ref[...],
                preferred_element_type=jnp.float32) + b2_ref[...]
    h = jnp.maximum(h, 0.0).astype(jnp.bfloat16)

    # ---- global_mean_pool (P @ H, row-normalized one-hot P) + final Linear.
    pooled = jnp.dot(p_ref[...], h, preferred_element_type=jnp.float32)
    o_ref[...] = jnp.dot(pooled.astype(jnp.bfloat16), wf_ref[...],
                         preferred_element_type=jnp.float32) + bf_ref[...]


# ------------------------------ JAX glue -------------------------------------

def build_normalized_adjacency(edge_index, num_nodes):
    """A_norm = D^{-1/2} (A + I) D^{-1/2}, A[target, source] = 1 per edge."""
    row, col = edge_index[0], edge_index[1]          # source, target (PyG order)
    loops = jnp.arange(num_nodes, dtype=edge_index.dtype)
    row = jnp.concatenate([row, loops])
    col = jnp.concatenate([col, loops])
    a = jnp.zeros((num_nodes, num_nodes), jnp.float32)
    a = a.at[col, row].add(1.0)                      # aggregate source -> target
    deg = a.sum(axis=1)                              # in-degree incl. self-loop
    dinv = jnp.where(deg > 0, jax.lax.rsqrt(deg), 0.0)
    return dinv[:, None] * a * dinv[None, :]


def build_pool_matrix(batch, num_graphs):
    onehot = (jnp.arange(num_graphs)[:, None] == batch[None, :]).astype(jnp.float32)
    counts = onehot.sum(axis=1, keepdims=True)
    return onehot / jnp.maximum(counts, 1.0)


def fold_bn_into_conv(w, b, gamma, beta, mean, var):
    """Inference-only: BN(h) with h = X@W + b  ==  X@(W*s) + ((b-mean)*s + beta)."""
    scale = gamma * jax.lax.rsqrt(var + BN_EPS)              # [1, F_out]
    return w * scale, (b - mean) * scale + beta


def _pad2(x, rows, cols):
    return jnp.pad(x, ((0, rows - x.shape[0]), (0, cols - x.shape[1])))


def _full_spec(arr):
    nd = arr.ndim
    return pl.BlockSpec(arr.shape, lambda *_: (0,) * nd)     # single full block


def gcn_forward(params, x, edge_index, batch, num_graphs):
    n, f_in = x.shape
    hidden = params["convs"][0][0].shape[1]
    num_classes = params["fc"][0].shape[1]
    assert len(params["convs"]) == 2, "fused kernel is specialized to num_layers=2"

    # lane-dense padded sizes
    np_ = _round_up(max(n, SUBLANE), LANE)
    fp = _round_up(f_in, LANE)
    hp = _round_up(hidden, LANE)
    cp = _round_up(num_classes, LANE)
    gp = _round_up(max(num_graphs, 1), SUBLANE)

    a_norm = build_normalized_adjacency(edge_index, n)        # f32 [n, n]
    pool = build_pool_matrix(batch, num_graphs)               # f32 [g, n]

    (w1, b1), (w2, b2) = params["convs"]
    bn1, bn2 = params["bns"]
    w1f, b1f = fold_bn_into_conv(w1, b1, *bn1)
    w2f, b2f = fold_bn_into_conv(w2, b2, *bn2)
    fc_w_t, fc_b = params["fc"]

    args = (
        _pad2(a_norm, np_, np_).astype(jnp.bfloat16),   # A
        _pad2(x, np_, fp).astype(jnp.bfloat16),         # X
        _pad2(w1f, fp, hp).astype(jnp.bfloat16),        # W1'
        _pad2(b1f, 1, hp),                              # b1' (f32)
        _pad2(w2f, hp, hp).astype(jnp.bfloat16),        # W2'
        _pad2(b2f, 1, hp),                              # b2' (f32)
        _pad2(pool, gp, np_).astype(jnp.bfloat16),      # P
        _pad2(fc_w_t, hp, cp).astype(jnp.bfloat16),     # Wf
        _pad2(fc_b, 1, cp),                             # bf (f32)
    )

    flops = 2 * (np_ * np_ * fp + np_ * fp * hp          # layer 1
                 + np_ * np_ * hp + np_ * hp * hp        # layer 2
                 + gp * np_ * hp + gp * hp * cp)         # pool + fc
    bytes_accessed = sum(a.size * a.dtype.itemsize for a in args) + gp * cp * 4

    out_padded = pl.pallas_call(
        gcn_fused_kernel,
        out_shape=jax.ShapeDtypeStruct((gp, cp), jnp.float32),
        in_specs=[_full_spec(a) for a in args],
        out_specs=pl.BlockSpec((gp, cp), lambda *_: (0, 0)),
        cost_estimate=pl.CostEstimate(flops=flops, transcendentals=0,
                                      bytes_accessed=bytes_accessed),
        compiler_params=pltpu.CompilerParams(vmem_limit_bytes=32 << 20),
    )(*args)
    return out_padded[:num_graphs, :num_classes]


gcn_forward_jit = functools.partial(jax.jit, static_argnames=("num_graphs",))(gcn_forward)


def gcn_forward_reference(params, x, edge_index, batch, num_graphs):
    """Pure-JAX f32 reference with identical (inference) semantics."""
    n = x.shape[0]
    a_norm = build_normalized_adjacency(edge_index, n)
    h = x
    for (w, b), (gamma, beta, mean, var) in zip(params["convs"], params["bns"]):
        h = a_norm @ (h @ w) + b
        h = (h - mean) * gamma * jax.lax.rsqrt(var + BN_EPS) + beta
        h = jnp.maximum(h, 0.0)
    pool = build_pool_matrix(batch, num_graphs)
    pooled = pool @ h
    fc_w_t, fc_b = params["fc"]
    return pooled @ fc_w_t + fc_b


def init_params(key, input_features, hidden, num_classes, num_layers=2):
    params = {"convs": [], "bns": []}
    dims_in = [input_features] + [hidden] * (num_layers - 1)
    for i in range(num_layers):
        key, kw = jax.random.split(key)
        f_in, f_out = dims_in[i], hidden
        scale = (2.0 / (f_in + f_out)) ** 0.5            # glorot-ish
        w = scale * jax.random.normal(kw, (f_in, f_out), jnp.float32)
        b = jnp.zeros((1, f_out), jnp.float32)
        params["convs"].append((w, b))
        params["bns"].append((jnp.ones((1, f_out), jnp.float32),    # gamma
                              jnp.zeros((1, f_out), jnp.float32),   # beta
                              jnp.zeros((1, f_out), jnp.float32),   # running_mean
                              jnp.ones((1, f_out), jnp.float32)))   # running_var
    key, kf = jax.random.split(key)
    fc_scale = (1.0 / hidden) ** 0.5
    fc_w_t = fc_scale * jax.random.normal(kf, (hidden, num_classes), jnp.float32)
    fc_b = jnp.zeros((1, num_classes), jnp.float32)
    params["fc"] = (fc_w_t, fc_b)
    return params


# --------------------------------- main --------------------------------------

if __name__ == "__main__":
    NUM_NODES = 32
    INPUT_FEATURES = 16
    HIDDEN = 32
    NUM_CLASSES = 8
    NUM_GRAPHS = 2
    NUM_LAYERS = 2
    NUM_RAND_EDGES = 40

    key = jax.random.PRNGKey(0)
    k_x, k_src, k_dst, k_params = jax.random.split(key, 4)

    x = jax.random.normal(k_x, (NUM_NODES, INPUT_FEATURES), jnp.float32)

    # deterministic random graph, symmetrized (both edge directions present)
    src = jax.random.randint(k_src, (NUM_RAND_EDGES,), 0, NUM_NODES, jnp.int32)
    dst = jax.random.randint(k_dst, (NUM_RAND_EDGES,), 0, NUM_NODES, jnp.int32)
    ei = jnp.stack([src, dst], axis=0)
    edge_index = jnp.concatenate([ei, ei[::-1]], axis=1)          # [2, 80]

    # first half of nodes -> graph 0, second half -> graph 1
    batch = jnp.concatenate([
        jnp.zeros((NUM_NODES // 2,), jnp.int32),
        jnp.ones((NUM_NODES - NUM_NODES // 2,), jnp.int32),
    ])

    params = init_params(k_params, INPUT_FEATURES, HIDDEN, NUM_CLASSES, NUM_LAYERS)

    out = gcn_forward_jit(params, x, edge_index, batch, num_graphs=NUM_GRAPHS)
    out = jax.block_until_ready(out)
    assert out.shape == (NUM_GRAPHS, NUM_CLASSES)
    assert bool(jnp.all(jnp.isfinite(out)))

    ref = gcn_forward_reference(params, x, edge_index, batch, NUM_GRAPHS)
    ref = jax.block_until_ready(ref)
    assert bool(jnp.all(jnp.abs(out - ref) <= 5e-2 + 5e-2 * jnp.abs(ref))), (
        "kernel output diverges from pure-JAX reference")

    print("KERNEL_OK")
</pallas_src>

<mosaic_0001>
module attributes {stable_mosaic.version = 11 : i64} {
  func.func private @main(%arg0: i32) attributes {dimension_semantics = [#tpu.dimension_semantics<core_parallel>], iteration_bounds = array<i64: 2>, tpu.core_type = #tpu.core_type<sc_scalar_subcore>, window_params = []} {
    return
  }
}

module attributes {stable_mosaic.version = 11 : i64} {
  func.func private @main(%arg0: i32) attributes {dimension_semantics = [#tpu.dimension_semantics<core_parallel>], iteration_bounds = array<i64: 2>, tpu.core_type = #tpu.core_type<sc_scalar_subcore>, window_params = []} {
    return
  }
}

module attributes {stable_mosaic.version = 11 : i64} {
  func.func @gcn_fused_kernel(%arg0: memref<128x128xbf16, #tpu.memory_space<vmem>>, %arg1: memref<128x128xbf16, #tpu.memory_space<vmem>>, %arg2: memref<128x128xbf16, #tpu.memory_space<vmem>>, %arg3: memref<1x128xf32, #tpu.memory_space<vmem>>, %arg4: memref<128x128xbf16, #tpu.memory_space<vmem>>, %arg5: memref<1x128xf32, #tpu.memory_space<vmem>>, %arg6: memref<8x128xbf16, #tpu.memory_space<vmem>>, %arg7: memref<128x128xbf16, #tpu.memory_space<vmem>>, %arg8: memref<1x128xf32, #tpu.memory_space<vmem>>, %arg9: memref<8x128xf32, #tpu.memory_space<vmem>>) attributes {dimension_semantics = [], scalar_prefetch = 0 : i64, scratch_operands = 0 : i64, tpu.core_type = #tpu.core_type<tc>} {
    %c0 = arith.constant 0 : index
    %c0_0 = arith.constant 0 : index
    %0 = vector.load %arg0[%c0, %c0_0] : memref<128x128xbf16, #tpu.memory_space<vmem>>, vector<128x128xbf16>
    %c0_1 = arith.constant 0 : index
    %c0_2 = arith.constant 0 : index
    %1 = vector.load %arg1[%c0_1, %c0_2] : memref<128x128xbf16, #tpu.memory_space<vmem>>, vector<128x128xbf16>
    %cst = arith.constant dense<0.000000e+00> : vector<128x128xf32>
    %2 = tpu.matmul %0, %1, %cst {dimension_numbers = #tpu.dot_dimension_numbers<[1], [0], [0], [1], [0, 0, 1, 1], [], []>} : vector<128x128xbf16>, vector<128x128xbf16>, vector<128x128xf32> -> vector<128x128xf32>
    %3 = arith.truncf %2 : vector<128x128xf32> to vector<128x128xbf16>
    %c0_3 = arith.constant 0 : index
    %c0_4 = arith.constant 0 : index
    %4 = vector.load %arg2[%c0_3, %c0_4] : memref<128x128xbf16, #tpu.memory_space<vmem>>, vector<128x128xbf16>
    %cst_5 = arith.constant dense<0.000000e+00> : vector<128x128xf32>
    %5 = tpu.matmul %3, %4, %cst_5 {dimension_numbers = #tpu.dot_dimension_numbers<[1], [0], [0], [1], [0, 0, 1, 1], [], []>} : vector<128x128xbf16>, vector<128x128xbf16>, vector<128x128xf32> -> vector<128x128xf32>
    %c0_6 = arith.constant 0 : index
    %c0_7 = arith.constant 0 : index
    %6 = vector.load %arg3[%c0_6, %c0_7] : memref<1x128xf32, #tpu.memory_space<vmem>>, vector<1x128xf32>
    %7 = vector.broadcast %6 : vector<1x128xf32> to vector<128x128xf32>
    %8 = arith.addf %5, %7 : vector<128x128xf32>
    %cst_8 = arith.constant 0.000000e+00 : f32
    %9 = vector.broadcast %cst_8 : f32 to vector<128x128xf32>
    %10 = arith.maximumf %8, %9 : vector<128x128xf32>
    %11 = arith.truncf %10 : vector<128x128xf32> to vector<128x128xbf16>
    %cst_9 = arith.constant dense<0.000000e+00> : vector<128x128xf32>
    %12 = tpu.matmul %0, %11, %cst_9 {dimension_numbers = #tpu.dot_dimension_numbers<[1], [0], [0], [1], [0, 0, 1, 1], [], []>} : vector<128x128xbf16>, vector<128x128xbf16>, vector<128x128xf32> -> vector<128x128xf32>
    %13 = arith.truncf %12 : vector<128x128xf32> to vector<128x128xbf16>
    %c0_10 = arith.constant 0 : index
    %c0_11 = arith.constant 0 : index
    %14 = vector.load %arg4[%c0_10, %c0_11] : memref<128x128xbf16, #tpu.memory_space<vmem>>, vector<128x128xbf16>
    %cst_12 = arith.constant dense<0.000000e+00> : vector<128x128xf32>
    %15 = tpu.matmul %13, %14, %cst_12 {dimension_numbers = #tpu.dot_dimension_numbers<[1], [0], [0], [1], [0, 0, 1, 1], [], []>} : vector<128x128xbf16>, vector<128x128xbf16>, vector<128x128xf32> -> vector<128x128xf32>
    %c0_13 = arith.constant 0 : index
    %c0_14 = arith.constant 0 : index
    %16 = vector.load %arg5[%c0_13, %c0_14] : memref<1x128xf32, #tpu.memory_space<vmem>>, vector<1x128xf32>
    %17 = vector.broadcast %16 : vector<1x128xf32> to vector<128x128xf32>
    %18 = arith.addf %15, %17 : vector<128x128xf32>
    %cst_15 = arith.constant 0.000000e+00 : f32
    %19 = vector.broadcast %cst_15 : f32 to vector<128x128xf32>
    %20 = arith.maximumf %18, %19 : vector<128x128xf32>
    %21 = arith.truncf %20 : vector<128x128xf32> to vector<128x128xbf16>
    %c0_16 = arith.constant 0 : index
    %c0_17 = arith.constant 0 : index
    %22 = vector.load %arg6[%c0_16, %c0_17] : memref<8x128xbf16, #tpu.memory_space<vmem>>, vector<8x128xbf16>
    %cst_18 = arith.constant dense<0.000000e+00> : vector<8x128xf32>
    %23 = tpu.matmul %22, %21, %cst_18 {dimension_numbers = #tpu.dot_dimension_numbers<[1], [0], [0], [1], [0, 0, 1, 1], [], []>} : vector<8x128xbf16>, vector<128x128xbf16>, vector<8x128xf32> -> vector<8x128xf32>
    %24 = arith.truncf %23 : vector<8x128xf32> to vector<8x128xbf16>
    %c0_19 = arith.constant 0 : index
    %c0_20 = arith.constant 0 : index
    %25 = vector.load %arg7[%c0_19, %c0_20] : memref<128x128xbf16, #tpu.memory_space<vmem>>, vector<128x128xbf16>
    %cst_21 = arith.constant dense<0.000000e+00> : vector<8x128xf32>
    %26 = tpu.matmul %24, %25, %cst_21 {dimension_numbers = #tpu.dot_dimension_numbers<[1], [0], [0], [1], [0, 0, 1, 1], [], []>} : vector<8x128xbf16>, vector<128x128xbf16>, vector<8x128xf32> -> vector<8x128xf32>
    %c0_22 = arith.constant 0 : index
    %c0_23 = arith.constant 0 : index
    %27 = vector.load %arg8[%c0_22, %c0_23] : memref<1x128xf32, #tpu.memory_space<vmem>>, vector<1x128xf32>
    %28 = vector.broadcast %27 : vector<1x128xf32> to vector<8x128xf32>
    %29 = arith.addf %26, %28 : vector<8x128xf32>
    %c0_24 = arith.constant 0 : index
    %c0_25 = arith.constant 0 : index
    %30 = vector.load %arg9[%c0_24, %c0_25] : memref<8x128xf32, #tpu.memory_space<vmem>>, vector<8x128xf32>
    tpu.vector_store %arg9[%c0_24, %c0_25], %29 {strides = array<i32>} : memref<8x128xf32, #tpu.memory_space<vmem>>, vector<8x128xf32>,
    return
  }
}

</mosaic_0001>

<bundles_post_ra>
// kernel: gcn_forward.1
= control target key start
LH: loop header
LB: loop body
LE: loop exit
PB: predicated region body
PF: predicated region fallthrough
CT: control target
= control target key end

     0   :  { %vm1249_vm0 = vmmov 0   ;;  %s1481_s1 = inlined_call_operand.vmem [shape: bf16[128,128], index: 1, kind: input, shape index: {}]   ;;  %s1482_s0 = inlined_call_operand.vmem [shape: bf16[128,128], index: 0, kind: input, shape index: {}]   ;;  %s1483_s2 = inlined_call_operand.vmem [shape: bf16[128,128], index: 2, kind: input, shape index: {}]   ;;  %s1484_s4 = inlined_call_operand.vmem [shape: bf16[128,128], index: 4, kind: input, shape index: {}]   ;;  %s1485_s3 = inlined_call_operand.vmem [shape: f32[1,128], index: 3, kind: input, shape index: {}]   ;;  %s1486_s7 = inlined_call_operand.vmem [shape: bf16[128,128], index: 7, kind: input, shape index: {}]   ;;  %s1487_s5 = inlined_call_operand.vmem [shape: f32[1,128], index: 5, kind: input, shape index: {}]   ;;  %s1488_s6 = inlined_call_operand.vmem [shape: bf16[8,128], index: 6, kind: input, shape index: {}]   ;;  %s1489_s8 = inlined_call_operand.vmem [shape: f32[1,128], index: 8, kind: input, shape index: {}]   ;;  %s1490_s9 = inlined_call_operand.vmem [shape: f32[8,128], index: 9, kind: output, shape index: {}]  }
   0x1   :  { %v1208_v0 = vld [vmem:[%s1481_s1] sm:$0xff]   ;;  %v1209_v1 = vld [vmem:[%s1481_s1 + $0x8] sm:$0xff]   ;;  %v1210_v2 = vld [vmem:[%s1481_s1 + $0x10] sm:$0xff]  }
   0x2   :  { %1038 = vmatprep.subr.bf16.mxu0 %v1208_v0  ;;  %v1211_v3 = vld [vmem:[%s1481_s1 + $0x18] sm:$0xff]   ;;  %v1216_v4 = vld [vmem:[%s1482_s0] sm:$0xff]   ;;  %v1213_v6 = vld [vmem:[%s1481_s1 + $0x28] sm:$0xff]  }
   0x3   :  { %1039 = vmatpush3.bf16.msra.mxu0 %v1208_v0  ;;  %1054 = vmatprep.mubr.bf16.mxu0 %v1216_v4  ;;  %v1212_v5 = vld [vmem:[%s1481_s1 + $0x20] sm:$0xff]   ;;  %v1225_v8 = vld [vmem:[%s1483_s2 + $0x8] sm:$0xff]   ;;  %v1214_v9 = vld [vmem:[%s1481_s1 + $0x30] sm:$0xff]  }
   0x4   :  { %1040 = vmatprep.subr.bf16.mxu0 %v1209_v1  ;;  %v1224_v7 = vld [vmem:[%s1483_s2] sm:$0xff]   ;;  %v1226_v10 = vld [vmem:[%s1483_s2 + $0x10] sm:$0xff]   ;;  %v1215_v11 = vld [vmem:[%s1481_s1 + $0x38] sm:$0xff]  }
   0x5   :  { %1070 = vmatprep.subr.bf16.mxu1 %v1224_v7  ;;  %v1227_v12 = vld [vmem:[%s1483_s2 + $0x18] sm:$0xff]   ;;  %v1228_v13 = vld [vmem:[%s1483_s2 + $0x20] sm:$0xff]   ;;  %v1345_v14 = vld [vmem:[%s1482_s0 + $0x8] sm:$0xff]  }
   0x6   :  { %1071 = vmatpush3.bf16.msra.mxu1 %v1224_v7  ;;  %v1350_v15 = vld [vmem:[%s1482_s0 + $0x10] sm:$0xff]   ;;  %v1229_v16 = vld [vmem:[%s1483_s2 + $0x28] sm:$0xff]   ;;  %v1363_v18 = vld [vmem:[%s1482_s0 + $0x18] sm:$0xff]  }
   0x7   :  { %1041 = vmatpush3.bf16.msra.mxu0 %v1209_v1  ;;  %1072 = vmatprep.subr.bf16.mxu1 %v1225_v8  ;;  %v1230_v17 = vld [vmem:[%s1483_s2 + $0x30] sm:$0xff]   ;;  %v1368_v19 = vld [vmem:[%s1482_s0 + $0x20] sm:$0xff]   ;;  %v1375_v20 = vld [vmem:[%s1482_s0 + $0x28] sm:$0xff]  }
   0x8   :  { %1042 = vmatprep.subr.bf16.mxu0 %v1210_v2  ;;  %v1380_v21 = vld [vmem:[%s1482_s0 + $0x30] sm:$0xff]   ;;  %v1387_v22 = vld [vmem:[%s1482_s0 + $0x38] sm:$0xff]   ;;  %v1232_v48 = vld [vmem:[%s1484_s4] sm:$0xff]  }
   0x9   :  { %v1231_v23 = vld [vmem:[%s1483_s2 + $0x38] sm:$0xff]   ;;  %v1233_v49 = vld [vmem:[%s1484_s4 + $0x8] sm:$0xff]   ;;  %v1234_v50 = vld [vmem:[%s1484_s4 + $0x10] sm:$0xff]  }
   0xa   :  { %1073 = vmatpush3.bf16.msra.mxu1 %v1225_v8  ;;  %v1235_v51 = vld [vmem:[%s1484_s4 + $0x18] sm:$0xff]   ;;  %v1236_v52 = vld [vmem:[%s1484_s4 + $0x20] sm:$0xff]   ;;  %v1237_v53 = vld [vmem:[%s1484_s4 + $0x28] sm:$0xff]  }
   0xb   :  { %1043 = vmatpush3.bf16.msra.mxu0 %v1210_v2  ;;  %1074 = vmatprep.subr.bf16.mxu1 %v1226_v10  ;;  %v1238_v54 = vld [vmem:[%s1484_s4 + $0x30] sm:$0xff]   ;;  %v929_v55 = vld [vmem:[%s1485_s3] ss:$0 sm:$0xff] }
   0xc   :  { %1044 = vmatprep.subr.bf16.mxu0 %v1211_v3 }
   0xe   :  { %1075 = vmatpush3.bf16.msra.mxu1 %v1226_v10 }
   0xf   :  { %1045 = vmatpush3.bf16.msra.mxu0 %v1211_v3  ;;  %1076 = vmatprep.subr.bf16.mxu1 %v1227_v12 }
  0x10   :  { %1046 = vmatprep.subr.bf16.mxu0 %v1212_v5 }
  0x12   :  { %1077 = vmatpush3.bf16.msra.mxu1 %v1227_v12 }
  0x13   :  { %1047 = vmatpush3.bf16.msra.mxu0 %v1212_v5  ;;  %1078 = vmatprep.subr.bf16.mxu1 %v1228_v13 }
  0x14   :  { %1048 = vmatprep.subr.bf16.mxu0 %v1213_v6 }
  0x16   :  { %1079 = vmatpush3.bf16.msra.mxu1 %v1228_v13 }
  0x17   :  { %1049 = vmatpush3.bf16.msra.mxu0 %v1213_v6  ;;  %1080 = vmatprep.subr.bf16.mxu1 %v1229_v16 }
  0x18   :  { %1050 = vmatprep.subr.bf16.mxu0 %v1214_v9 }
  0x1a   :  { %1081 = vmatpush3.bf16.msra.mxu1 %v1229_v16 }
  0x1b   :  { %1051 = vmatpush3.bf16.msra.mxu0 %v1214_v9  ;;  %1082 = vmatprep.subr.bf16.mxu1 %v1230_v17 }
  0x1c   :  { %1052 = vmatprep.subr.bf16.mxu0 %v1215_v11 }
  0x1e   :  { %1083 = vmatpush3.bf16.msra.mxu1 %v1230_v17 }
  0x1f   :  { %1053 = vmatpush3.bf16.msra.mxu0 %v1215_v11  ;;  %1084 = vmatprep.subr.bf16.mxu1 %v1231_v23 }
  0x22   :  { %1055 = vmatmul.mubr.bf16.vlgmr.msra.gmra.mrb[0].mxu0 %v1345_v14  ;;  %1085 = vmatpush3.bf16.msra.mxu1 %v1231_v23 }
  0x23   :  { %1058 = vmatprep.mubr.bf16.mxu0 %v1350_v15  ;;  %1134 = vmatprep.subr.bf16.mxu1 %v1232_v48 }
  0x2a   :  { %1059 = vmatmul.mubr.bf16.gmra.mrb[4].mxu0 %v1363_v18 }
  0x2b   :  { %1062 = vmatprep.mubr.bf16.mxu0 %v1368_v19 }
  0x32   :  { %1063 = vmatmul.mubr.bf16.gmra.mrb[8].mxu0 %v1375_v20 }
  0x33   :  { %1066 = vmatprep.mubr.bf16.mxu0 %v1380_v21 }
  0x3a   :  { %1067 = vmatmul.mubr.bf16.gmra.mrb[12].mxu0 %v1387_v22 }
  0x3b   :  { %1118 = vmatprep.mubr.bf16.mxu0 %v1216_v4 }
  0xf5   :  { %v1056_v24 = vpop.f32.mrb[0].mxu0 }
  0xf6   :  { %v195_v25 = vpop.f32.mrb[1].mxu0 }
  0xf7   :  { %v1057_v26 = vpop.f32.mrb[2].mxu0 }
  0xf8   :  { %v259_v27 = vpack.c.bf16 %v1057_v26, %v1056_v24  ;;  %v198_v28 = vpop.f32.mrb[3].mxu0 }
  0xf9   :  { %v258_v29 = vpack.c.bf16 %v198_v28, %v195_v25 }
  0xfb   :  { %1086 = vmatprep.mubr.bf16.mxu1 %v258_v29 }
  0xfc   :  { %1087 = vmatmul.mubr.bf16.vlgmr.msra.gmra.mrb[0].mxu1 %v259_v27 }
  0xfd   :  { %v1060_v30 = vpop.f32.mrb[4].mxu0  ;;  %1135 = vmatpush3.bf16.msra.mxu1 %v1232_v48 }
  0xfe   :  { %v211_v31 = vpop.f32.mrb[5].mxu0  ;;  %1136 = vmatprep.subr.bf16.mxu1 %v1233_v49 }
  0xff   :  { %v1061_v32 = vpop.f32.mrb[6].mxu0 }
 0x100   :  { %v261_v33 = vpack.c.bf16 %v1061_v32, %v1060_v30  ;;  %v214_v34 = vpop.f32.mrb[7].mxu0 }
 0x101   :  { %v260_v35 = vpack.c.bf16 %v214_v34, %v211_v31  ;;  %1137 = vmatpush3.bf16.msra.mxu1 %v1233_v49 }
 0x102   :  { %1138 = vmatprep.subr.bf16.mxu1 %v1234_v50 }
 0x103   :  { %1090 = vmatprep.mubr.bf16.mxu1 %v260_v35 }
 0x104   :  { %1091 = vmatmul.mubr.bf16.gmra.mrb[4].mxu1 %v261_v33 }
 0x105   :  { %v1064_v36 = vpop.f32.mrb[8].mxu0  ;;  %1139 = vmatpush3.bf16.msra.mxu1 %v1234_v50 }
 0x106   :  { %v227_v37 = vpop.f32.mrb[9].mxu0  ;;  %1140 = vmatprep.subr.bf16.mxu1 %v1235_v51 }
 0x107   :  { %v1065_v38 = vpop.f32.mrb[10].mxu0 }
 0x108   :  { %v263_v39 = vpack.c.bf16 %v1065_v38, %v1064_v36  ;;  %v230_v40 = vpop.f32.mrb[11].mxu0 }
 0x109   :  { %v262_v41 = vpack.c.bf16 %v230_v40, %v227_v37  ;;  %1141 = vmatpush3.bf16.msra.mxu1 %v1235_v51 }
 0x10a   :  { %1142 = vmatprep.subr.bf16.mxu1 %v1236_v52 }
 0x10b   :  { %1094 = vmatprep.mubr.bf16.mxu1 %v262_v41 }
 0x10c   :  { %1095 = vmatmul.mubr.bf16.gmra.mrb[8].mxu1 %v263_v39 }
 0x10d   :  { %v1068_v42 = vpop.f32.mrb[12].mxu0  ;;  %1143 = vmatpush3.bf16.msra.mxu1 %v1236_v52 }
 0x10e   :  { %v243_v43 = vpop.f32.mrb[13].mxu0  ;;  %1144 = vmatprep.subr.bf16.mxu1 %v1237_v53 }
 0x10f   :  { %v1069_v44 = vpop.f32.mrb[14].mxu0 }
 0x110   :  { %v265_v45 = vpack.c.bf16 %v1069_v44, %v1068_v42  ;;  %v246_v46 = vpop.f32.mrb[15].mxu0 }
 0x111   :  { %v264_v47 = vpack.c.bf16 %v246_v46, %v243_v43  ;;  %1145 = vmatpush3.bf16.msra.mxu1 %v1237_v53 }
 0x112   :  { %1146 = vmatprep.subr.bf16.mxu1 %v1238_v54 }
 0x113   :  { %1098 = vmatprep.mubr.bf16.mxu1 %v264_v47 }
 0x114   :  { %1099 = vmatmul.mubr.bf16.gmra.mrb[12].mxu1 %v265_v45 }
 0x115   :  { %1147 = vmatpush3.bf16.msra.mxu1 %v1238_v54 }
 0x1cf   :  { %v1088_v56 = vpop.f32.mrb[0].mxu1 }
 0x1d0   :  { %v380_v57 = vadd.f32 %v1088_v56, %v929_v55  ;;  %v371_v58 = vpop.f32.mrb[1].mxu1 }
 0x1d1   :  { %v372_v59 = vadd.f32 %v929_v55, %v371_v58  ;;  %v1089_v60 = vpop.f32.mrb[2].mxu1 }
 0x1d2   :  { %v383_v61 = vadd.f32 %v1089_v60, %v929_v55  ;;  %v374_v62 = vpop.f32.mrb[3].mxu1  ;;  %v436_v0 = vmax.f32 %v380_v57, 0.0 }
 0x1d3   :  { %v375_v63 = vadd.f32 %v929_v55, %v374_v62  ;;  %v434_v2 = vmax.f32 %v372_v59, 0.0 }
 0x1d4   :  { %v437_v1 = vmax.f32 %v383_v61, 0.0 }
 0x1d5   :  { %v435_v3 = vmax.f32 %v375_v63, 0.0 }
 0x1d6   :  { %v451_v4 = vpack.c.bf16 %v437_v1, %v436_v0 }
 0x1d7   :  { %v450_v5 = vpack.c.bf16 %v435_v3, %v434_v2  ;;  %v1092_v6 = vpop.f32.mrb[4].mxu1 }
 0x1d8   :  { %v396_v7 = vadd.f32 %v1092_v6, %v929_v55  ;;  %v387_v8 = vpop.f32.mrb[5].mxu1 }
 0x1d9   :  { %v388_v9 = vadd.f32 %v929_v55, %v387_v8  ;;  %v1093_v10 = vpop.f32.mrb[6].mxu1  ;;  %1102 = vmatprep.subr.bf16.mxu0 %v450_v5 }
 0x1da   :  { %v399_v11 = vadd.f32 %v1093_v10, %v929_v55  ;;  %v390_v12 = vpop.f32.mrb[7].mxu1  ;;  %1103 = vmatpush3.bf16.msra.mxu0 %v450_v5  ;;  %v440_v16 = vmax.f32 %v396_v7, 0.0  ;;  %v1240_v10 = vld [vmem:[%s1486_s7] sm:$0xff]  }
 0x1db   :  { %v391_v13 = vadd.f32 %v929_v55, %v390_v12  ;;  %1104 = vmatprep.subr.bf16.mxu0 %v451_v4  ;;  %v438_v23 = vmax.f32 %v388_v9, 0.0  ;;  %v1248_v9 = vmov 0.0   ;;  %v1242_v12 = vld [vmem:[%s1486_s7 + $0x10] sm:$0xff]  }
 0x1dc   :  { %v441_v17 = vmax.f32 %v399_v11, 0.0  ;;  %v1241_v11 = vld [vmem:[%s1486_s7 + $0x8] sm:$0xff]  }
 0x1dd   :  { %v439_v24 = vmax.f32 %v391_v13, 0.0  ;;  %v1243_v13 = vld [vmem:[%s1486_s7 + $0x18] sm:$0xff]  }
 0x1de   :  { %v453_v25 = vpack.c.bf16 %v441_v17, %v440_v16  ;;  %1105 = vmatpush3.bf16.msra.mxu0 %v451_v4  ;;  %v1244_v16 = vld [vmem:[%s1486_s7 + $0x20] sm:$0xff]   ;;  %v1245_v17 = vld [vmem:[%s1486_s7 + $0x28] sm:$0xff]  }
 0x1df   :  { %v452_v26 = vpack.c.bf16 %v439_v24, %v438_v23  ;;  %v1096_v27 = vpop.f32.mrb[8].mxu1  ;;  %v1246_v23 = vld [vmem:[%s1486_s7 + $0x30] sm:$0xff]   ;;  %v938_v24 = vld [vmem:[%s1487_s5] ss:$0 sm:$0xff] }
 0x1e0   :  { %v412_v28 = vadd.f32 %v1096_v27, %v929_v55  ;;  %v403_v29 = vpop.f32.mrb[9].mxu1 }
 0x1e1   :  { %v404_v30 = vadd.f32 %v929_v55, %v403_v29  ;;  %v1097_v31 = vpop.f32.mrb[10].mxu1  ;;  %1106 = vmatprep.subr.bf16.mxu0 %v452_v26 }
 0x1e2   :  { %v415_v32 = vadd.f32 %v1097_v31, %v929_v55  ;;  %v406_v33 = vpop.f32.mrb[11].mxu1  ;;  %1107 = vmatpush3.bf16.msra.mxu0 %v452_v26  ;;  %v444_v35 = vmax.f32 %v412_v28, 0.0 }
 0x1e3   :  { %v407_v34 = vadd.f32 %v929_v55, %v406_v33  ;;  %1108 = vmatprep.subr.bf16.mxu0 %v453_v25  ;;  %v442_v37 = vmax.f32 %v404_v30, 0.0 }
 0x1e4   :  { %v445_v36 = vmax.f32 %v415_v32, 0.0 }
 0x1e5   :  { %v443_v38 = vmax.f32 %v407_v34, 0.0 }
 0x1e6   :  { %v455_v39 = vpack.c.bf16 %v445_v36, %v444_v35  ;;  %1109 = vmatpush3.bf16.msra.mxu0 %v453_v25 }
 0x1e7   :  { %v454_v40 = vpack.c.bf16 %v443_v38, %v442_v37  ;;  %v1100_v41 = vpop.f32.mrb[12].mxu1 }
 0x1e8   :  { %v428_v42 = vadd.f32 %v1100_v41, %v929_v55  ;;  %v419_v43 = vpop.f32.mrb[13].mxu1 }
 0x1e9   :  { %v420_v44 = vadd.f32 %v929_v55, %v419_v43  ;;  %v1101_v45 = vpop.f32.mrb[14].mxu1  ;;  %1110 = vmatprep.subr.bf16.mxu0 %v454_v40 }
 0x1ea   :  { %v431_v46 = vadd.f32 %v1101_v45, %v929_v55  ;;  %v422_v47 = vpop.f32.mrb[15].mxu1  ;;  %1111 = vmatpush3.bf16.msra.mxu0 %v454_v40  ;;  %v448_v49 = vmax.f32 %v428_v42, 0.0 }
 0x1eb   :  { %v423_v48 = vadd.f32 %v929_v55, %v422_v47  ;;  %1112 = vmatprep.subr.bf16.mxu0 %v455_v39  ;;  %v446_v51 = vmax.f32 %v420_v44, 0.0  ;;  %v1239_v55 = vld [vmem:[%s1484_s4 + $0x38] sm:$0xff]  }
 0x1ec   :  { %v449_v50 = vmax.f32 %v431_v46, 0.0  ;;  %1148 = vmatprep.subr.bf16.mxu1 %v1239_v55 }
 0x1ed   :  { %v447_v52 = vmax.f32 %v423_v48, 0.0  ;;  %1149 = vmatpush3.bf16.msra.mxu1 %v1239_v55 }
 0x1ee   :  { %v457_v53 = vpack.c.bf16 %v449_v50, %v448_v49  ;;  %1113 = vmatpush3.bf16.msra.mxu0 %v455_v39  ;;  %1186 = vmatprep.subr.bf16.mxu1 %v1248_v9 }
 0x1ef   :  { %v456_v54 = vpack.c.bf16 %v447_v52, %v446_v51 }
 0x1f1   :  { %1114 = vmatprep.subr.bf16.mxu0 %v456_v54 }
 0x1f2   :  { %1115 = vmatpush3.bf16.msra.mxu0 %v456_v54 }
 0x1f3   :  { %1116 = vmatprep.subr.bf16.mxu0 %v457_v53 }
 0x1f6   :  { %1117 = vmatpush3.bf16.msra.mxu0 %v457_v53 }
 0x1f7   :  { %1166 = vmatprep.subr.bf16.mxu0 %v1248_v9 }
 0x1f9   :  { %1119 = vmatmul.mubr.bf16.vlgmr.msra.gmra.mrb[16].mxu0 %v1345_v14 }
 0x1fa   :  { %1122 = vmatprep.mubr.bf16.mxu0 %v1350_v15 }
 0x201   :  { %1123 = vmatmul.mubr.bf16.gmra.mrb[20].mxu0 %v1363_v18 }
 0x202   :  { %1126 = vmatprep.mubr.bf16.mxu0 %v1368_v19 }
 0x209   :  { %1127 = vmatmul.mubr.bf16.gmra.mrb[24].mxu0 %v1375_v20 }
 0x20a   :  { %1130 = vmatprep.mubr.bf16.mxu0 %v1380_v21 }
 0x211   :  { %1131 = vmatmul.mubr.bf16.gmra.mrb[28].mxu0 %v1387_v22 }
 0x212   :  { %1182 = vmatprep.mubr.msk.bf16.mxu0 %vm1249_vm0, %v1248_v9 }
 0x2cc   :  { %v1120_v56 = vpop.f32.mrb[16].mxu0 }
 0x2cd   :  { %v492_v14 = vpop.f32.mrb[17].mxu0 }
 0x2ce   :  { %v1121_v57 = vpop.f32.mrb[18].mxu0 }
 0x2cf   :  { %v556_v15 = vpack.c.bf16 %v1121_v57, %v1120_v56  ;;  %v495_v58 = vpop.f32.mrb[19].mxu0 }
 0x2d0   :  { %v555_v18 = vpack.c.bf16 %v495_v58, %v492_v14 }
 0x2d2   :  { %1150 = vmatprep.mubr.bf16.mxu1 %v555_v18 }
 0x2d3   :  { %1151 = vmatmul.mubr.bf16.vlgmr.msra.gmra.mrb[16].mxu1 %v556_v15 }
 0x2d4   :  { %v1124_v19 = vpop.f32.mrb[20].mxu0  ;;  %1187 = vmatpush3.bf16.msra.mxu1 %v1240_v10 }
 0x2d5   :  { %v508_v20 = vpop.f32.mrb[21].mxu0  ;;  %1188 = vmatprep.subr.bf16.mxu1 %v1248_v9 }
 0x2d6   :  { %v1125_v59 = vpop.f32.mrb[22].mxu0 }
 0x2d7   :  { %v558_v21 = vpack.c.bf16 %v1125_v59, %v1124_v19  ;;  %v511_v60 = vpop.f32.mrb[23].mxu0 }
 0x2d8   :  { %v557_v22 = vpack.c.bf16 %v511_v60, %v508_v20  ;;  %1189 = vmatpush3.bf16.msra.mxu1 %v1241_v11  ;;  %v755_v11 = vld [vmem:[%s1488_s6] sm:$0xf] }
 0x2d9   :  { %1190 = vmatprep.subr.bf16.mxu1 %v1248_v9 }
 0x2da   :  { %1154 = vmatprep.mubr.bf16.mxu1 %v557_v22 }
 0x2db   :  { %1155 = vmatmul.mubr.bf16.gmra.mrb[20].mxu1 %v558_v21 }
 0x2dc   :  { %v1128_v61 = vpop.f32.mrb[24].mxu0  ;;  %1191 = vmatpush3.bf16.msra.mxu1 %v1242_v12  ;;  %v1247_v12 = vld [vmem:[%s1486_s7 + $0x38] sm:$0xff]  }
 0x2dd   :  { %v524_v62 = vpop.f32.mrb[25].mxu0  ;;  %1192 = vmatprep.subr.bf16.mxu1 %v1248_v9 }
 0x2de   :  { %v1129_v63 = vpop.f32.mrb[26].mxu0 }
 0x2df   :  { %v560_v0 = vpack.c.bf16 %v1129_v63, %v1128_v61  ;;  %v527_v1 = vpop.f32.mrb[27].mxu0 }
 0x2e0   :  { %v559_v2 = vpack.c.bf16 %v527_v1, %v524_v62  ;;  %1193 = vmatpush3.bf16.msra.mxu1 %v1243_v13 }
 0x2e1   :  { %1194 = vmatprep.subr.bf16.mxu1 %v1248_v9 }
 0x2e2   :  { %1158 = vmatprep.mubr.bf16.mxu1 %v559_v2 }
 0x2e3   :  { %1159 = vmatmul.mubr.bf16.gmra.mrb[24].mxu1 %v560_v0 }
 0x2e4   :  { %v1132_v3 = vpop.f32.mrb[28].mxu0  ;;  %1195 = vmatpush3.bf16.msra.mxu1 %v1244_v16 }
 0x2e5   :  { %v540_v4 = vpop.f32.mrb[29].mxu0  ;;  %1196 = vmatprep.subr.bf16.mxu1 %v1248_v9 }
 0x2e6   :  { %v1133_v5 = vpop.f32.mrb[30].mxu0 }
 0x2e7   :  { %v562_v6 = vpack.c.bf16 %v1133_v5, %v1132_v3  ;;  %v543_v7 = vpop.f32.mrb[31].mxu0 }
 0x2e8   :  { %v561_v8 = vpack.c.bf16 %v543_v7, %v540_v4  ;;  %1197 = vmatpush3.bf16.msra.mxu1 %v1245_v17 }
 0x2e9   :  { %1198 = vmatprep.subr.bf16.mxu1 %v1248_v9 }
 0x2ea   :  { %1162 = vmatprep.mubr.bf16.mxu1 %v561_v8 }
 0x2eb   :  { %1163 = vmatmul.mubr.bf16.gmra.mrb[28].mxu1 %v562_v6 }
 0x2ec   :  { %1202 = vmatprep.mubr.msk.bf16.mxu1 %vm1249_vm0, %v1248_v9  ;;  %1199 = vmatpush3.bf16.msra.mxu1 %v1246_v23 }
 0x2ed   :  { %1200 = vmatprep.subr.bf16.mxu1 %v1248_v9 }
 0x2f0   :  { %1201 = vmatpush3.bf16.msra.mxu1 %v1247_v12 }
 0x3a6   :  { %v1152_v25 = vpop.f32.mrb[16].mxu1 }
 0x3a7   :  { %v677_v26 = vadd.f32 %v1152_v25, %v938_v24  ;;  %v668_v27 = vpop.f32.mrb[17].mxu1 }
 0x3a8   :  { %v669_v28 = vadd.f32 %v938_v24, %v668_v27  ;;  %v1153_v29 = vpop.f32.mrb[18].mxu1 }
 0x3a9   :  { %v680_v30 = vadd.f32 %v1153_v29, %v938_v24  ;;  %v671_v31 = vpop.f32.mrb[19].mxu1  ;;  %v733_v33 = vmax.f32 %v677_v26, 0.0 }
 0x3aa   :  { %v672_v32 = vadd.f32 %v938_v24, %v671_v31  ;;  %v731_v35 = vmax.f32 %v669_v28, 0.0 }
 0x3ab   :  { %v734_v34 = vmax.f32 %v680_v30, 0.0 }
 0x3ac   :  { %v732_v36 = vmax.f32 %v672_v32, 0.0 }
 0x3ad   :  { %v748_v37 = vpack.c.bf16 %v734_v34, %v733_v33 }
 0x3ae   :  { %v747_v38 = vpack.c.bf16 %v732_v36, %v731_v35  ;;  %v1156_v39 = vpop.f32.mrb[20].mxu1 }
 0x3af   :  { %v693_v40 = vadd.f32 %v1156_v39, %v938_v24  ;;  %v684_v41 = vpop.f32.mrb[21].mxu1 }
 0x3b0   :  { %v685_v42 = vadd.f32 %v938_v24, %v684_v41  ;;  %v1157_v43 = vpop.f32.mrb[22].mxu1  ;;  %1167 = vmatpush3.bf16.msra.mxu0 %v747_v38 }
 0x3b1   :  { %v696_v44 = vadd.f32 %v1157_v43, %v938_v24  ;;  %v687_v45 = vpop.f32.mrb[23].mxu1  ;;  %1168 = vmatprep.subr.bf16.mxu0 %v1248_v9  ;;  %v737_v47 = vmax.f32 %v693_v40, 0.0 }
 0x3b2   :  { %v688_v46 = vadd.f32 %v938_v24, %v687_v45  ;;  %v735_v49 = vmax.f32 %v685_v42, 0.0 }
 0x3b3   :  { %v738_v48 = vmax.f32 %v696_v44, 0.0 }
 0x3b4   :  { %v736_v50 = vmax.f32 %v688_v46, 0.0  ;;  %1169 = vmatpush3.bf16.msra.mxu0 %v748_v37 }
 0x3b5   :  { %v750_v51 = vpack.c.bf16 %v738_v48, %v737_v47  ;;  %1170 = vmatprep.subr.bf16.mxu0 %v1248_v9 }
 0x3b6   :  { %v749_v52 = vpack.c.bf16 %v736_v50, %v735_v49  ;;  %v1160_v53 = vpop.f32.mrb[24].mxu1 }
 0x3b7   :  { %v709_v54 = vadd.f32 %v1160_v53, %v938_v24  ;;  %v700_v55 = vpop.f32.mrb[25].mxu1 }
 0x3b8   :  { %v701_v56 = vadd.f32 %v938_v24, %v700_v55  ;;  %v1161_v14 = vpop.f32.mrb[26].mxu1  ;;  %1171 = vmatpush3.bf16.msra.mxu0 %v749_v52 }
 0x3b9   :  { %v712_v57 = vadd.f32 %v1161_v14, %v938_v24  ;;  %v703_v15 = vpop.f32.mrb[27].mxu1  ;;  %1172 = vmatprep.subr.bf16.mxu0 %v1248_v9  ;;  %v741_v18 = vmax.f32 %v709_v54, 0.0 }
 0x3ba   :  { %v704_v58 = vadd.f32 %v938_v24, %v703_v15  ;;  %v739_v20 = vmax.f32 %v701_v56, 0.0 }
 0x3bb   :  { %v742_v19 = vmax.f32 %v712_v57, 0.0 }
 0x3bc   :  { %v740_v59 = vmax.f32 %v704_v58, 0.0  ;;  %1173 = vmatpush3.bf16.msra.mxu0 %v750_v51 }
 0x3bd   :  { %v752_v21 = vpack.c.bf16 %v742_v19, %v741_v18  ;;  %1174 = vmatprep.subr.bf16.mxu0 %v1248_v9 }
 0x3be   :  { %v751_v60 = vpack.c.bf16 %v740_v59, %v739_v20  ;;  %v1164_v22 = vpop.f32.mrb[28].mxu1 }
 0x3bf   :  { %v725_v61 = vadd.f32 %v1164_v22, %v938_v24  ;;  %v716_v62 = vpop.f32.mrb[29].mxu1 }
 0x3c0   :  { %v717_v63 = vadd.f32 %v938_v24, %v716_v62  ;;  %v1165_v0 = vpop.f32.mrb[30].mxu1  ;;  %1175 = vmatpush3.bf16.msra.mxu0 %v751_v60 }
 0x3c1   :  { %v728_v1 = vadd.f32 %v1165_v0, %v938_v24  ;;  %v719_v2 = vpop.f32.mrb[31].mxu1  ;;  %1176 = vmatprep.subr.bf16.mxu0 %v1248_v9  ;;  %v745_v4 = vmax.f32 %v725_v61, 0.0 }
 0x3c2   :  { %v720_v3 = vadd.f32 %v938_v24, %v719_v2  ;;  %v743_v6 = vmax.f32 %v717_v63, 0.0 }
 0x3c3   :  { %v746_v5 = vmax.f32 %v728_v1, 0.0 }
 0x3c4   :  { %v744_v7 = vmax.f32 %v720_v3, 0.0  ;;  %1177 = vmatpush3.bf16.msra.mxu0 %v752_v21 }
 0x3c5   :  { %v754_v8 = vpack.c.bf16 %v746_v5, %v745_v4  ;;  %1178 = vmatprep.subr.bf16.mxu0 %v1248_v9 }
 0x3c6   :  { %v753_v10 = vpack.c.bf16 %v744_v7, %v743_v6 }
 0x3c8   :  { %1179 = vmatpush3.bf16.msra.mxu0 %v753_v10 }
 0x3c9   :  { %1180 = vmatprep.subr.bf16.mxu0 %v1248_v9  ;;  %v947_v9 = vld [vmem:[%s1489_s8] ss:$0 sm:$0xff] }
 0x3cc   :  { %1181 = vmatpush3.bf16.msra.mxu0 %v754_v8 }
 0x3cf   :  { %1183 = vmatmul.mubr.bf16.vlgmr.msra.gmra.mrb[32].mxu0 %v755_v11 }
 0x4a2   :  { %v790_v13 = vpop.f32.mrb[32].mxu0 }
 0x4a3   :  { %v796_v16 = vpack.c.bf16 %v790_v13, %v790_v13  ;;  %v1184_v17 = vpop.f32.mrb[33].mxu0 }
 0x4a4   :  { %v793_v23 = vpop.f32.mrb[34].mxu0 }
 0x4a5   :  { %v1185_v24 = vpop.f32.mrb[35].mxu0  ;;  %1203 = vmatmul.mubr.bf16.vlgmr.msra.gmra.mrb[32].mxu1 %v796_v16 }
 0x578   :  { %v902_v25 = vpop.f32.mrb[32].mxu1 }
 0x579   :  { %v903_v26 = vadd.f32 %v947_v9, %v902_v25  ;;  %v1204_v27 = vpop.f32.mrb[33].mxu1 }
 0x57a   :  { %v905_v28 = vpop.f32.mrb[34].mxu1 }
 0x57b   :  { %908 = vst [vmem:[%s1490_s9] sm:$0xff] %v903_v26  ;;  %v1205_v29 = vpop.f32.mrb[35].mxu1 }

</bundles_post_ra>
